<compile_context>
chip_gen: v7x
topology: tpu7x:2x2x1
jax: 0.10.0
libtpu: 0.0.40
codegen_flags: <defaults>
</compile_context>

<pallas_src>
import functools
import math

import jax
import jax.numpy as jnp
from jax.experimental import pallas as pl
from jax.experimental.pallas import tpu as pltpu


def _mlp_kernel(x_ref, w1_ref, b1_ref, w2_ref, b2_ref, o_ref, *,
                approximate_gelu: bool, use_vpu_first_layer: bool):
    # x_ref: (1, C_in, t_hw); w1_ref: (C_mid, C_in); b1_ref: (C_mid, 1);
    # w2_ref: (C_out, C_mid); b2_ref: (C_out, 1); o_ref: (1, C_out, t_hw).
    x = x_ref[0]                                           # (C_in, t_hw), native (bf16) dtype

    if use_vpu_first_layer:
        # K-starved first matmul (C_in << MXU depth): unrolled lane-broadcast FMAs on the VPU,
        # keeping the MXU free for the second (larger-K) matmul.  f32 math throughout.
        xf = x.astype(jnp.float32)                         # (C_in, t_hw)
        w1f = w1_ref[...].astype(jnp.float32)              # (C_mid, C_in)
        c_in = xf.shape[0]
        h = w1f[:, 0:1] * xf[0:1, :]
        for c in range(1, c_in):
            h = h + w1f[:, c:c + 1] * xf[c:c + 1, :]
        h = h + b1_ref[...]                                # (C_mid, t_hw) f32
    else:
        h = jnp.dot(w1_ref[...], x, preferred_element_type=jnp.float32)
        h = h + b1_ref[...]

    if approximate_gelu:
        # tanh GELU -> EUP slot (runs alongside VPU/MXU/DMA), f32 math.
        h = jax.nn.gelu(h, approximate=True)
    else:
        # Exact erf GELU, matching PyTorch F.gelu default.
        h = 0.5 * h * (1.0 + jax.lax.erf(h * jnp.float32(1.0 / math.sqrt(2.0))))

    # Second layer on the MXU in the weight dtype (bf16 path when weights are bf16), f32 accum.
    o = jnp.dot(w2_ref[...], h.astype(w2_ref.dtype), preferred_element_type=jnp.float32)
    o = o + b2_ref[...]
    o_ref[0] = o.astype(o_ref.dtype)


def _round_up(x, m):
    return (x + m - 1) // m * m


def _pick_spatial_tile(hw, max_tile):
    """Return (t_hw, hw_padded): a lane-dense (multiple of 128) tile and the padded extent.

    Prefers a 128-multiple divisor of hw (no padding pass); otherwise pads hw up so every
    tile is unmasked and lane-dense (no vst.msk, no giant single-block fallback).
    """
    max_tile = max(128, (max_tile // 128) * 128)
    best = None
    t = 128
    while t <= min(hw, max_tile):
        if hw % t == 0:
            best = t
        t += 128
    if best is not None:
        return best, hw
    t = min(max_tile, _round_up(hw, 128))
    return t, _round_up(hw, t)


@functools.partial(
    jax.jit,
    static_argnames=("max_tile", "compute_dtype", "approximate_gelu", "out_dtype"),
)
def mlp_forward(x_nchw, w1, b1, w2, b2, *,
                max_tile=8192,
                compute_dtype=jnp.bfloat16,
                approximate_gelu=True,
                out_dtype=None):
    """x_nchw: (B, C_in, H, W); w1: (C_mid, C_in); b1: (C_mid,); w2: (C_out, C_mid); b2: (C_out,)."""
    B, C_in, H, W = x_nchw.shape
    C_mid = w1.shape[0]
    C_out = w2.shape[0]
    HW = H * W
    if out_dtype is None:
        out_dtype = compute_dtype

    t_hw, hw_pad = _pick_spatial_tile(HW, max_tile)

    # v7x megacore: keep >= 4 grid steps so both TensorCores get work (no-op on v5e/v6e beyond
    # slightly deeper pipelining).
    while B * (hw_pad // t_hw) < 4 and t_hw > 128 and t_hw % 256 == 0:
        t_hw //= 2

    n_tiles = hw_pad // t_hw

    # Free view NCHW -> (B, C, H*W); cast activations/weights to the compute dtype (bf16).
    x3 = x_nchw.reshape(B, C_in, HW).astype(compute_dtype)
    if hw_pad != HW:
        x3 = jnp.pad(x3, ((0, 0), (0, 0), (0, hw_pad - HW)))
    w1c = w1.astype(compute_dtype)
    w2c = w2.astype(compute_dtype)

    # Biases as (C, 1) f32 columns so they broadcast along the lane (spatial) axis.
    b1_2d = b1.reshape(C_mid, 1).astype(jnp.float32)
    b2_2d = b2.reshape(C_out, 1).astype(jnp.float32)

    # Explicit VMEM budget sized from the actual footprint (double-buffered x/out tiles,
    # weights, f32 hidden activations) with 2x headroom; clamp to [32 MiB, 48 MiB] so it is
    # comfortable on v5e's 16 MiB scoped default yet safely under v7x's 64 MiB physical VMEM.
    itemsize = jnp.dtype(compute_dtype).itemsize
    est_bytes = (
        2 * (C_in * itemsize + C_out * jnp.dtype(out_dtype).itemsize) * t_hw  # x/out tiles (x2 buf)
        + 2 * (C_mid * C_in + C_out * C_mid) * itemsize                       # weights
        + 2 * (C_mid + C_out) * 4                                             # biases
        + 2 * C_mid * t_hw * 4                                                # f32 hidden + slack
    )
    vmem_limit = int(min(max(2 * est_bytes, 32 << 20), 48 << 20))

    kernel = functools.partial(
        _mlp_kernel,
        approximate_gelu=approximate_gelu,
        use_vpu_first_layer=(C_in <= 8),
    )

    out3 = pl.pallas_call(
        kernel,
        out_shape=jax.ShapeDtypeStruct((B, C_out, hw_pad), out_dtype),
        grid_spec=pltpu.PrefetchScalarGridSpec(
            num_scalar_prefetch=0,
            grid=(B, n_tiles),
            in_specs=[
                pl.BlockSpec((1, C_in, t_hw), lambda b, j: (b, 0, j)),   # x tile (spatial on lanes)
                pl.BlockSpec((C_mid, C_in), lambda b, j: (0, 0)),        # W1 (grid-invariant)
                pl.BlockSpec((C_mid, 1), lambda b, j: (0, 0)),           # b1
                pl.BlockSpec((C_out, C_mid), lambda b, j: (0, 0)),       # W2
                pl.BlockSpec((C_out, 1), lambda b, j: (0, 0)),           # b2
            ],
            out_specs=pl.BlockSpec((1, C_out, t_hw), lambda b, j: (b, 0, j)),
        ),
        compiler_params=pltpu.CompilerParams(
            dimension_semantics=("parallel", "parallel"),
            vmem_limit_bytes=vmem_limit,
        ),
    )(x3, w1c, b1_2d, w2c, b2_2d)

    if hw_pad != HW:
        out3 = out3[:, :, :HW]
    return out3.reshape(B, C_out, H, W)


def init_mlp_params(key, in_channels, mid_channels, out_channels):
    """Deterministic init mimicking nn.Conv2d(k=1) defaults; weights kept in PyTorch
    (out_channels, in_channels) orientation so the kernel computes W @ x directly."""
    k1, k2, k3, k4 = jax.random.split(key, 4)
    bound1 = 1.0 / math.sqrt(in_channels)     # fan_in = in_channels * 1 * 1
    bound2 = 1.0 / math.sqrt(mid_channels)
    w1 = jax.random.uniform(k1, (mid_channels, in_channels), jnp.float32, -bound1, bound1)
    b1 = jax.random.uniform(k2, (mid_channels,), jnp.float32, -bound1, bound1)
    w2 = jax.random.uniform(k3, (out_channels, mid_channels), jnp.float32, -bound2, bound2)
    b2 = jax.random.uniform(k4, (out_channels,), jnp.float32, -bound2, bound2)
    return w1, b1, w2, b2


def mlp_reference(x_nchw, w1, b1, w2, b2, *, approximate_gelu=False):
    """Pure-JAX reference of the PyTorch forward (1x1 convs as channel einsums)."""
    h = jnp.einsum("bchw,mc->bmhw", x_nchw, w1) + b1[None, :, None, None]
    if approximate_gelu:
        h = jax.nn.gelu(h, approximate=True)
    else:
        h = 0.5 * h * (1.0 + jax.lax.erf(h / jnp.sqrt(2.0)))
    o = jnp.einsum("bmhw,om->bohw", h, w2) + b2[None, :, None, None]
    return o


if __name__ == "__main__":
    key = jax.random.PRNGKey(0)
    k_x, k_p = jax.random.split(key)

    B, C_in, H, W = 2, 4, 16, 16
    C_mid, C_out = 32, 4

    x = jax.random.normal(k_x, (B, C_in, H, W), jnp.float32)
    w1, b1, w2, b2 = init_mlp_params(k_p, C_in, C_mid, C_out)

    # Default fast path: bf16 I/O + tanh GELU (perf-feedback configuration).
    out = jax.block_until_ready(mlp_forward(x, w1, b1, w2, b2))
    assert out.shape == (B, C_out, H, W), out.shape
    ref = mlp_reference(x, w1, b1, w2, b2, approximate_gelu=True)
    err = float(jnp.max(jnp.abs(out.astype(jnp.float32) - ref)))
    assert err < 5e-2, err   # bf16 activations/weights/output, f32 accumulation

    # Strict path: f32 I/O + exact erf GELU matches PyTorch's default F.gelu semantics tightly.
    out_f32 = jax.block_until_ready(
        mlp_forward(x, w1, b1, w2, b2,
                    compute_dtype=jnp.float32, approximate_gelu=False, out_dtype=jnp.float32))
    ref_f32 = mlp_reference(x, w1, b1, w2, b2, approximate_gelu=False)
    assert jnp.allclose(out_f32, ref_f32, atol=1e-5, rtol=1e-5), \
        float(jnp.max(jnp.abs(out_f32 - ref_f32)))

    print("KERNEL_OK")
</pallas_src>

<mosaic_0001>
module attributes {stable_mosaic.version = 11 : i64} {
  func.func @_mlp_kernel(%arg0: i32, %arg1: i32, %arg2: memref<1x4x128xbf16, #tpu.memory_space<vmem>>, %arg3: memref<32x4xbf16, #tpu.memory_space<vmem>>, %arg4: memref<32x1xf32, #tpu.memory_space<vmem>>, %arg5: memref<4x32xbf16, #tpu.memory_space<vmem>>, %arg6: memref<4x1xf32, #tpu.memory_space<vmem>>, %arg7: memref<1x4x128xbf16, #tpu.memory_space<vmem>>) attributes {dimension_semantics = [#tpu.dimension_semantics<parallel>, #tpu.dimension_semantics<parallel>], iteration_bounds = array<i64: 2, 2>, scalar_prefetch = 0 : i64, scratch_operands = 0 : i64, tpu.core_type = #tpu.core_type<tc>, window_params = [{transform_indices = @transform_0, window_bounds = array<i64: 1, 4, 128>}, {pipeline_mode = #tpu.pipeline_mode<synchronous>, transform_indices = @transform_1, window_bounds = array<i64: 32, 4>}, {pipeline_mode = #tpu.pipeline_mode<synchronous>, transform_indices = @transform_2, window_bounds = array<i64: 32, 1>}, {pipeline_mode = #tpu.pipeline_mode<synchronous>, transform_indices = @transform_3, window_bounds = array<i64: 4, 32>}, {pipeline_mode = #tpu.pipeline_mode<synchronous>, transform_indices = @transform_4, window_bounds = array<i64: 4, 1>}, {transform_indices = @transform_5, window_bounds = array<i64: 1, 4, 128>}]} {
    %c0 = arith.constant 0 : index
    %c0_0 = arith.constant 0 : index
    %c0_1 = arith.constant 0 : index
    %0 = vector.load %arg2[%c0, %c0_0, %c0_1] : memref<1x4x128xbf16, #tpu.memory_space<vmem>>, vector<1x4x128xbf16>
    %1 = vector.shape_cast %0 : vector<1x4x128xbf16> to vector<4x128xbf16>
    %2 = arith.extf %1 : vector<4x128xbf16> to vector<4x128xf32>
    %c0_2 = arith.constant 0 : index
    %c0_3 = arith.constant 0 : index
    %3 = vector.load %arg3[%c0_2, %c0_3] : memref<32x4xbf16, #tpu.memory_space<vmem>>, vector<32x4xbf16>
    %4 = arith.extf %3 : vector<32x4xbf16> to vector<32x4xf32>
    %5 = vector.extract_strided_slice %4 {offsets = [0, 0], sizes = [32, 1], strides = [1, 1]} : vector<32x4xf32> to vector<32x1xf32>
    %6 = vector.extract_strided_slice %2 {offsets = [0, 0], sizes = [1, 128], strides = [1, 1]} : vector<4x128xf32> to vector<1x128xf32>
    %7 = vector.broadcast %5 : vector<32x1xf32> to vector<32x128xf32>
    %8 = vector.broadcast %6 : vector<1x128xf32> to vector<32x128xf32>
    %9 = arith.mulf %7, %8 : vector<32x128xf32>
    %10 = vector.extract_strided_slice %4 {offsets = [0, 1], sizes = [32, 1], strides = [1, 1]} : vector<32x4xf32> to vector<32x1xf32>
    %11 = vector.extract_strided_slice %2 {offsets = [1, 0], sizes = [1, 128], strides = [1, 1]} : vector<4x128xf32> to vector<1x128xf32>
    %12 = vector.broadcast %10 : vector<32x1xf32> to vector<32x128xf32>
    %13 = vector.broadcast %11 : vector<1x128xf32> to vector<32x128xf32>
    %14 = arith.mulf %12, %13 : vector<32x128xf32>
    %15 = arith.addf %9, %14 : vector<32x128xf32>
    %16 = vector.extract_strided_slice %4 {offsets = [0, 2], sizes = [32, 1], strides = [1, 1]} : vector<32x4xf32> to vector<32x1xf32>
    %17 = vector.extract_strided_slice %2 {offsets = [2, 0], sizes = [1, 128], strides = [1, 1]} : vector<4x128xf32> to vector<1x128xf32>
    %18 = vector.broadcast %16 : vector<32x1xf32> to vector<32x128xf32>
    %19 = vector.broadcast %17 : vector<1x128xf32> to vector<32x128xf32>
    %20 = arith.mulf %18, %19 : vector<32x128xf32>
    %21 = arith.addf %15, %20 : vector<32x128xf32>
    %22 = vector.extract_strided_slice %4 {offsets = [0, 3], sizes = [32, 1], strides = [1, 1]} : vector<32x4xf32> to vector<32x1xf32>
    %23 = vector.extract_strided_slice %2 {offsets = [3, 0], sizes = [1, 128], strides = [1, 1]} : vector<4x128xf32> to vector<1x128xf32>
    %24 = vector.broadcast %22 : vector<32x1xf32> to vector<32x128xf32>
    %25 = vector.broadcast %23 : vector<1x128xf32> to vector<32x128xf32>
    %26 = arith.mulf %24, %25 : vector<32x128xf32>
    %27 = arith.addf %21, %26 : vector<32x128xf32>
    %c0_4 = arith.constant 0 : index
    %c0_5 = arith.constant 0 : index
    %28 = vector.load %arg4[%c0_4, %c0_5] : memref<32x1xf32, #tpu.memory_space<vmem>>, vector<32x1xf32>
    %29 = vector.broadcast %28 : vector<32x1xf32> to vector<32x128xf32>
    %30 = arith.addf %27, %29 : vector<32x128xf32>
    %31 = arith.mulf %30, %30 : vector<32x128xf32>
    %32 = arith.mulf %30, %31 : vector<32x128xf32>
    %cst = arith.constant 4.471500e-02 : f32
    %33 = vector.broadcast %cst : f32 to vector<32x128xf32>
    %34 = arith.mulf %33, %32 : vector<32x128xf32>
    %35 = arith.addf %30, %34 : vector<32x128xf32>
    %cst_6 = arith.constant 0.797884583 : f32
    %36 = vector.broadcast %cst_6 : f32 to vector<32x128xf32>
    %37 = arith.mulf %36, %35 : vector<32x128xf32>
    %38 = math.tanh %37 : vector<32x128xf32>
    %cst_7 = arith.constant 1.000000e+00 : f32
    %39 = vector.broadcast %cst_7 : f32 to vector<32x128xf32>
    %40 = arith.addf %39, %38 : vector<32x128xf32>
    %cst_8 = arith.constant 5.000000e-01 : f32
    %41 = vector.broadcast %cst_8 : f32 to vector<32x128xf32>
    %42 = arith.mulf %41, %40 : vector<32x128xf32>
    %43 = arith.mulf %30, %42 : vector<32x128xf32>
    %c0_9 = arith.constant 0 : index
    %c0_10 = arith.constant 0 : index
    %44 = vector.load %arg5[%c0_9, %c0_10] : memref<4x32xbf16, #tpu.memory_space<vmem>>, vector<4x32xbf16>
    %45 = arith.truncf %43 : vector<32x128xf32> to vector<32x128xbf16>
    %cst_11 = arith.constant dense<0.000000e+00> : vector<4x128xf32>
    %46 = tpu.matmul %44, %45, %cst_11 {dimension_numbers = #tpu.dot_dimension_numbers<[1], [0], [0], [1], [0, 0, 1, 1], [], []>} : vector<4x32xbf16>, vector<32x128xbf16>, vector<4x128xf32> -> vector<4x128xf32>
    %c0_12 = arith.constant 0 : index
    %c0_13 = arith.constant 0 : index
    %47 = vector.load %arg6[%c0_12, %c0_13] : memref<4x1xf32, #tpu.memory_space<vmem>>, vector<4x1xf32>
    %48 = vector.broadcast %47 : vector<4x1xf32> to vector<4x128xf32>
    %49 = arith.addf %46, %48 : vector<4x128xf32>
    %50 = arith.truncf %49 : vector<4x128xf32> to vector<4x128xbf16>
    %c0_14 = arith.constant 0 : index
    %c0_15 = arith.constant 0 : index
    %c0_16 = arith.constant 0 : index
    %51 = vector.load %arg7[%c0_14, %c0_15, %c0_16] : memref<1x4x128xbf16, #tpu.memory_space<vmem>>, vector<1x4x128xbf16>
    %52 = vector.shape_cast %51 : vector<1x4x128xbf16> to vector<4x128xbf16>
    %53 = vector.shape_cast %50 : vector<4x128xbf16> to vector<1x4x128xbf16>
    tpu.vector_store %arg7[%c0_14, %c0_15, %c0_16], %53 {strides = array<i32>} : memref<1x4x128xbf16, #tpu.memory_space<vmem>>, vector<1x4x128xbf16>,
    return
  }
  func.func @transform_0(%arg0: i32, %arg1: i32) -> (i32, i32, i32) {
    %c0_i32 = arith.constant 0 : i32
    %c0_i32_0 = arith.constant 0 : i32
    return %arg0, %c0_i32, %arg1 : i32, i32, i32
  }
  func.func @transform_1(%arg0: i32, %arg1: i32) -> (i32, i32) {
    %c0_i32 = arith.constant 0 : i32
    %c0_i32_0 = arith.constant 0 : i32
    %c0_i32_1 = arith.constant 0 : i32
    return %c0_i32, %c0_i32_0 : i32, i32
  }
  func.func @transform_2(%arg0: i32, %arg1: i32) -> (i32, i32) {
    %c0_i32 = arith.constant 0 : i32
    %c0_i32_0 = arith.constant 0 : i32
    %c0_i32_1 = arith.constant 0 : i32
    return %c0_i32, %c0_i32_0 : i32, i32
  }
  func.func @transform_3(%arg0: i32, %arg1: i32) -> (i32, i32) {
    %c0_i32 = arith.constant 0 : i32
    %c0_i32_0 = arith.constant 0 : i32
    %c0_i32_1 = arith.constant 0 : i32
    return %c0_i32, %c0_i32_0 : i32, i32
  }
  func.func @transform_4(%arg0: i32, %arg1: i32) -> (i32, i32) {
    %c0_i32 = arith.constant 0 : i32
    %c0_i32_0 = arith.constant 0 : i32
    %c0_i32_1 = arith.constant 0 : i32
    return %c0_i32, %c0_i32_0 : i32, i32
  }
  func.func @transform_5(%arg0: i32, %arg1: i32) -> (i32, i32, i32) {
    %c0_i32 = arith.constant 0 : i32
    %c0_i32_0 = arith.constant 0 : i32
    return %arg0, %c0_i32, %arg1 : i32, i32, i32
  }
}

</mosaic_0001>

<bundles_post_ra>
// kernel: mlp_forward.1
= control target key start
LH: loop header
LB: loop body
LE: loop exit
PB: predicated region body
PF: predicated region fallthrough
CT: control target
= control target key end

     0   :  { %s796_s18 = smov 0   ;;  %s798_s19 = smov 0   ;;  %s889_s0 = inlined_call_operand.vmem [shape: bf16[2,4,256], index: 0, kind: input, shape index: {}]   ;;  %s890_s1 = inlined_call_operand.vmem [shape: bf16[32,4], index: 1, kind: input, shape index: {}]   ;;  %s891_s2 = inlined_call_operand.vmem [shape: f32[32,1], index: 2, kind: input, shape index: {}]   ;;  %s892_s3 = inlined_call_operand.vmem [shape: bf16[4,32], index: 3, kind: input, shape index: {}]   ;;  %s893_s4 = inlined_call_operand.vmem [shape: f32[4,1], index: 4, kind: input, shape index: {}]   ;;  %s894_s5 = inlined_call_operand.vmem [shape: bf16[2,4,256], index: 5, kind: output, shape index: {}]  }
   0x1   :  { %s800_s20 = smov 0   ;;  %s802_s21 = smov 0  }
   0x2   :  { %s804_s22 = smov 0  }
   0x3 LB: > { %s24_s23 = sadd.s32 1, %s750_s20  ;;  %s27_s24 = sadd.s32 1, %s754_s21  ;;  %s758_s22 = sphi %s804_s22, %s15_s22   ;;  %s754_s21 = sphi %s802_s21, %s898_s21   ;;  %s750_s20 = sphi %s800_s20, %s897_s20   ;;  %s746_s19 = sphi %s798_s19, %s896_s19   ;;  %s742_s18 = sphi %s796_s18, %s895_s18  }
   0x4   : > { %p25_p0 = scmp.ge.s32.totalorder %s24_s23, 2  ;;  %p588_p1 = scmp.ge.s32.totalorder %s758_s22, 1 }
   0x5   : > { %p206_p2 = scmp.lt.s32.totalorder %s758_s22, 5 }
   0x6   : > { %s900_s23 = smov (%p25_p0, %s24_s23), 0  ;;  %s902_s24 = smov (!%p25_p0, %s27_s24), %s754_s21 }
   0x7   : > { %p207_p3 = pnand %p588_p1, %p206_p2  ;;  %p29_p4 = scmp.ge.s32.totalorder %s902_s24, 2 }
   0x8   : > { %v597_v0 = vld [vmem:[%s890_s1] sm:$0xff] (!%p207_p3)   ;;  %v604_v1 = vld [vmem:[%s890_s1 + $0x8] sm:$0xff] (!%p207_p3)   ;;  %v760_v2 = vmov (!%p207_p3), 2   ;;  %v761_v3 = vmov (!%p207_p3), 0   ;;  %v762_v10 = vmov (!%p207_p3), 1   ;;  %v763_v11 = vmov (!%p207_p3), 3  }
   0x9   : > { %s904_s24 = smov (%p29_p4, %s902_s24), 0  ;;  %210 = sbr.rel (%p207_p3) target bundleno = 422 (0x1a6), region = 40 }
   0xa   : > { %674 = vset.pattern.permute.xlu1 (!%p207_p3), %v760_v2  ;;  %662 = vset.pattern.permute.xlu0 (!%p207_p3), %v761_v3  ;;  %v598_v4 = vunpack.c.l.bf16 (!%p207_p3), %v597_v0  ;;  %v599_v5 = vunpack.c.h.bf16 (!%p207_p3), %v597_v0  ;;  %v602_v6 = vunpack.c.l.bf16 (!%p207_p3), %v604_v1  ;;  %v603_v7 = vunpack.c.h.bf16 (!%p207_p3), %v604_v1  ;;  %v379_v12 = vld [vmem:[%s891_s2] sm:$0xff] (!%p207_p3)  ;;  %v382_v13 = vld [vmem:[%s891_s2 + $0x18] sm:$0xff] (!%p207_p3)  ;;  %v380_v14 = vld [vmem:[%s891_s2 + $0x8] sm:$0xff] (!%p207_p3)  ;;  %p240_p5 = scmp.lt.s32.totalorder (!%p207_p3), %s746_s19, 1  ;;  %p242_p6 = scmp.lt.s32.totalorder (!%p207_p3), %s742_s18, 1 }
   0xb   : > { %v381_v15 = vld [vmem:[%s891_s2 + $0x10] sm:$0xff] (!%p207_p3)  ;;  %v446_v16 = vld [vmem:[%s893_s4] sm:$0xf] (!%p207_p3)  ;;  %v764_v17 = vmov (!%p207_p3), 0.0   ;;  %vm765_vm0 = vmmov (!%p207_p3), 0   ;;  %v287_v18 = vlaneseq (!%p207_p3)  ;;  %vm452_vm1 = vcmask (!%p207_p3), 261120  }
   0xc   : > { %v675_v8 = vpack.i.bf16 (!%p207_p3), %v599_v5, %v598_v4  ;;  %v681_v9 = vpack.i.bf16 (!%p207_p3), %v603_v7, %v602_v6  ;;  %608 = vmatprep.subr.bf16.mxu0 (!%p207_p3), %v764_v17  ;;  %612 = vmatprep.mubr.msk.bf16.mxu0 (!%p207_p3), %vm765_vm0, %v764_v17 }
   0xd   : > { %v288_v19 = vshrl.u32 (!%p207_p3), %v287_v18, 7 }
   0xe   : > { %676 = vperm.xlu1 (!%p207_p3), %674, %v675_v8   ;;  %664 = vperm.xlu0 (!%p207_p3), %662, %v675_v8  }
   0xf   : > { %v289_v21 = vsub.s32 (!%p207_p3), 0, %v288_v19  ;;  %v313_v25 = vsub.s32 (!%p207_p3), 1, %v288_v19  ;;  %v341_v26 = vsub.s32 (!%p207_p3), 2, %v288_v19  ;;  %v369_v32 = vsub.s32 (!%p207_p3), 3, %v288_v19 }
  0x10   : > { %s906_s19 = smov (!%p240_p5, %s746_s19), 1  ;;  %s908_s18 = smov (!%p242_p6, %s742_s18), 1 }
  0x11   : > { %s589_s14 = sshll.u32 %s906_s19, 1 }
  0x12   : > { %680 = vset.pattern.permute.xlu1 %v761_v3  ;;  %668 = vset.pattern.permute.xlu0 %v762_v10  ;;  %s857_s15 = sadd.s32 %s589_s14, %s908_s18 }
  0x13   : > { %682 = vperm.xlu1 %680, %v681_v9   ;;  %670 = vperm.xlu0 %668, %v675_v8   ;;  %s590_s16 = sshll.u32 %s857_s15, 1 }
  0x14   : > { %s247_s26 = scalar_lea.vmem %s889_s0, %s590_s16  ;;  %s255_s29 = scalar_lea.vmem %s894_s5, %s590_s16 }
  0x15   : > { %v257_v20 = vld [vmem:[%s247_s26] sm:$0x3] }
  0x16   : > { %v258_v23 = vunpack.c.l.bf16 %v257_v20 }
  0x17   : > { %686 = vset.pattern.permute.xlu1 %v762_v10  ;;  %692 = vset.pattern.permute.xlu0 %v763_v11 }
  0x18   : > { %688 = vperm.xlu1 %686, %v681_v9   ;;  %694 = vperm.xlu0 %692, %v675_v8   ;;  %v290_v28 = vrot.slane %v258_v23, %v289_v21  ;;  %v314_v29 = vrot.slane %v258_v23, %v313_v25  ;;  %v342_v34 = vrot.slane %v258_v23, %v341_v26 }
  0x19   : > { %v370_v40 = vrot.slane %v258_v23, %v369_v32 }
  0x1c   : > { %698 = vset.pattern.permute.xlu1 %v760_v2  ;;  %710 = vset.pattern.permute.xlu0 %v761_v3 }
  0x1d   : > { %700 = vperm.xlu1 %698, %v681_v9   ;;  %385 = vperm.xlu0 %710, %v379_v12  }
  0x21   : > { %704 = vset.pattern.permute.xlu1 %v763_v11  ;;  %400 = vperm.xlu0 %710, %v382_v13  }
  0x22   : > { %706 = vperm.xlu1 %704, %v681_v9  }
  0x26   : > { %711 = vset.pattern.permute.xlu1 %v761_v3 }
  0x27   : > { %390 = vperm.xlu1 %711, %v380_v14  }
  0x2b   : > { %395 = vperm.xlu1 %711, %v381_v15  }
  0x2f   : > { %449 = vperm.xlu1 %711, %v446_v16  }
  0x8d   : > { %v677_v22 = vpop.permute.xlu1 %676  ;;  %v665_v24 = vpop.permute.xlu0 %664 }
  0x8e   : > { %v666_v27 = vunpack.i.l.bf16 %v665_v24  ;;  %v678_v33 = vunpack.i.l.bf16 %v677_v22  ;;  %v667_v37 = vunpack.i.h.bf16 %v665_v24  ;;  %v679_v51 = vunpack.i.h.bf16 %v677_v22 }
  0x90   : > { %v291_v35 = vmul.f32 %v666_v27, %v290_v28  ;;  %v343_v41 = vmul.f32 %v678_v33, %v342_v34  ;;  %v292_v46 = vmul.f32 %v667_v37, %v290_v28  ;;  %v344_v62 = vmul.f32 %v679_v51, %v342_v34 }
  0x92   : > { %v683_v30 = vpop.permute.xlu1 %682  ;;  %v671_v31 = vpop.permute.xlu0 %670 }
  0x93   : > { %v672_v36 = vunpack.i.l.bf16 %v671_v31  ;;  %v673_v38 = vunpack.i.h.bf16 %v671_v31  ;;  %v685_v52 = vunpack.i.h.bf16 %v683_v30  ;;  %v684_v63 = vunpack.i.l.bf16 %v683_v30 }
  0x95   : > { %v315_v39 = vmul.f32 %v672_v36, %v314_v29  ;;  %v316_v47 = vmul.f32 %v673_v38, %v314_v29  ;;  %v294_v1 = vmul.f32 %v685_v52, %v290_v28  ;;  %v293_v12 = vmul.f32 %v684_v63, %v290_v28 }
  0x97   : > { %v319_v42 = vadd.f32 %v315_v39, %v291_v35  ;;  %v689_v43 = vpop.permute.xlu1 %688  ;;  %v695_v44 = vpop.permute.xlu0 %694  ;;  %v320_v56 = vadd.f32 %v316_v47, %v292_v46 }
  0x98   : > { %v696_v45 = vunpack.i.l.bf16 %v695_v44  ;;  %v691_v49 = vunpack.i.h.bf16 %v689_v43  ;;  %v690_v57 = vunpack.i.l.bf16 %v689_v43  ;;  %v697_v58 = vunpack.i.h.bf16 %v695_v44 }
  0x99   : > { %v347_v48 = vadd.f32 %v343_v41, %v319_v42  ;;  %v348_v7 = vadd.f32 %v344_v62, %v320_v56 }
  0x9a   : > { %v371_v50 = vmul.f32 %v696_v45, %v370_v40  ;;  %v318_v60 = vmul.f32 %v691_v49, %v314_v29  ;;  %v317_v4 = vmul.f32 %v690_v57, %v314_v29  ;;  %v372_v5 = vmul.f32 %v697_v58, %v370_v40 }
  0x9c   : > { %v701_v53 = vpop.permute.xlu1 %700  ;;  %v386_v54 = vpop.permute.xlu0 %385  ;;  %v375_v55 = vadd.f32 %v371_v50, %v347_v48  ;;  %v322_v8 = vadd.f32 %v318_v60, %v294_v1  ;;  %v321_v18 = vadd.f32 %v317_v4, %v293_v12  ;;  %v376_v20 = vadd.f32 %v372_v5, %v348_v7 }
  0x9d   : > { %v703_v59 = vunpack.i.h.bf16 %v701_v53  ;;  %v702_v0 = vunpack.i.l.bf16 %v701_v53 }
  0x9e   : > { %v403_v61 = vadd.f32 %v386_v54, %v375_v55 }
  0x9f   : > { %v346_v2 = vmul.f32 %v703_v59, %v342_v34  ;;  %v345_v13 = vmul.f32 %v702_v0, %v342_v34 }
  0xa0   : > { %v407_v3 = vmul.f32 %v403_v61, %v403_v61  ;;  %v401_v21 = vpop.permute.xlu0 %400 }
  0xa1   : > { %v707_v6 = vpop.permute.xlu1 %706  ;;  %v350_v16 = vadd.f32 %v346_v2, %v322_v8  ;;  %v349_v26 = vadd.f32 %v345_v13, %v321_v18  ;;  %v443_v2 = vld [vmem:[%s892_s3] sm:$0x3] }
  0xa2   : > { %v411_v9 = vmul.f32 %v407_v3, %v403_v61  ;;  %v709_v10 = vunpack.i.h.bf16 %v707_v6  ;;  %v708_v11 = vunpack.i.l.bf16 %v707_v6 }
  0xa4   : > { %v415_v14 = vmul.f32 0.044715, %v411_v9  ;;  %v374_v15 = vmul.f32 %v709_v10, %v370_v40  ;;  %v373_v19 = vmul.f32 %v708_v11, %v370_v40 }
  0xa6   : > { %v419_v22 = vadd.f32 %v415_v14, %v403_v61  ;;  %v391_v23 = vpop.permute.xlu1 %390  ;;  %v378_v24 = vadd.f32 %v374_v15, %v350_v16  ;;  %v377_v31 = vadd.f32 %v373_v19, %v349_v26 }
  0xa7   : > { %v404_v25 = vadd.f32 %v391_v23, %v376_v20 }
  0xa8   : > { %v406_v27 = vadd.f32 %v401_v21, %v378_v24  ;;  %v423_v29 = vmul.f32 0.7978846, %v419_v22 }
  0xa9   : > { %v408_v30 = vmul.f32 %v404_v25, %v404_v25 }
  0xaa   : > { %v410_v32 = vmul.f32 %v406_v27, %v406_v27  ;;  %v396_v33 = vpop.permute.xlu1 %395  ;;  %712 = vtanh.f32 %v423_v29 }
  0xab   : > { %v412_v28 = vmul.f32 %v408_v30, %v404_v25  ;;  %v405_v34 = vadd.f32 %v396_v33, %v377_v31 }
  0xac   : > { %v414_v35 = vmul.f32 %v410_v32, %v406_v27 }
  0xad   : > { %v416_v36 = vmul.f32 0.044715, %v412_v28  ;;  %v409_v37 = vmul.f32 %v405_v34, %v405_v34 }
  0xae   : > { %v418_v38 = vmul.f32 0.044715, %v414_v35 }
  0xaf   : > { %v420_v39 = vadd.f32 %v416_v36, %v404_v25  ;;  %v413_v40 = vmul.f32 %v409_v37, %v405_v34 }
  0xb0   : > { %v422_v41 = vadd.f32 %v418_v38, %v406_v27 }
  0xb1   : > { %v424_v42 = vmul.f32 0.7978846, %v420_v39  ;;  %v417_v43 = vmul.f32 0.044715, %v413_v40 }
  0xb2   : > { %v426_v44 = vmul.f32 0.7978846, %v422_v41 }
  0xb3   : > { %v421_v45 = vadd.f32 %v417_v43, %v405_v34  ;;  %714 = vtanh.f32 %v424_v42 }
  0xb4   : > { %716 = vtanh.f32 %v426_v44  ;;  %v713_v47 = vpop.eup %712 }
  0xb5   : > { %v425_v46 = vmul.f32 0.7978846, %v421_v45  ;;  %v431_v48 = vadd.f32 1.0, %v713_v47 }
  0xb7   : > { %718 = vtanh.f32 %v425_v46  ;;  %v435_v52 = vmul.f32 0.5, %v431_v48 }
  0xb9   : > { %v439_v56 = vmul.f32 %v435_v52, %v403_v61  ;;  %v450_v61 = vpop.permute.xlu1 %449 }
  0xbd   : > { %v715_v49 = vpop.eup %714 }
  0xbe   : > { %v717_v50 = vpop.eup %716  ;;  %v432_v51 = vadd.f32 1.0, %v715_v49 }
  0xbf   : > { %v434_v53 = vadd.f32 1.0, %v717_v50 }
  0xc0   : > { %v436_v54 = vmul.f32 0.5, %v432_v51 }
  0xc1   : > { %v719_v55 = vpop.eup %718  ;;  %v438_v59 = vmul.f32 0.5, %v434_v53 }
  0xc2   : > { %v440_v57 = vmul.f32 %v436_v54, %v404_v25  ;;  %v433_v58 = vadd.f32 1.0, %v719_v55 }
  0xc3   : > { %v442_v0 = vmul.f32 %v438_v59, %v406_v27 }
  0xc4   : > { %v444_v60 = vpack.c.bf16 %v440_v57, %v439_v56  ;;  %v437_v62 = vmul.f32 0.5, %v433_v58 }
  0xc6   : > { %609 = vmatpush3.bf16.msra.mxu0 %v444_v60  ;;  %v441_v63 = vmul.f32 %v437_v62, %v405_v34 }
  0xc7   : > { %610 = vmatprep.subr.bf16.mxu0 %v764_v17 }
  0xc8   : > { %v445_v1 = vpack.c.bf16 %v442_v0, %v441_v63 }
  0xca   : > { %611 = vmatpush3.bf16.msra.mxu0 %v445_v1 }
  0xcd   : > { %613 = vmatmul.mubr.msk.bf16.vlgmr.msra.gmra.mrb[0].mxu0 %vm452_vm1, %v443_v2 }
 0x1a0   : > { %v490_v3 = vpop.f32.mrb[0].mxu0 }
 0x1a1   : > { %v491_v4 = vadd.f32 %v490_v3, %v450_v61  ;;  %v614_v5 = vpop.f32.mrb[1].mxu0 }
 0x1a2   : > { %v493_v6 = vpop.f32.mrb[2].mxu0 }
 0x1a3   : > { %v496_v7 = vpack.c.bf16 %v491_v4, %v491_v4  ;;  %v615_v17 = vpop.f32.mrb[3].mxu0 }
 0x1a5   : > { %497 = vst [vmem:[%s255_s29] sm:$0x3] %v496_v7 }
 0x1a6 PF: > { %s15_s22 = sadd.s32 1, %s758_s22   ;;  %s895_s18 = smov %s750_s20 }
 0x1a7   : > { %p12_p7 = scmp.ge.s32.totalorder %s15_s22, 6   ;;  %s896_s19 = smov %s754_s21 }
 0x1a8   : > { %s897_s20 = smov %s900_s23  ;;  %s898_s21 = smov %s904_s24 }
 0x1a9   :  { %14 = sbr.rel (!%p12_p7) target bundleno = 3 (0x3), region = 70 }

</bundles_post_ra>
